<compile_context>
chip_gen: v5e
topology: v5e:2x2
jax: 0.10.0
libtpu: 0.0.40
codegen_flags: <defaults>
</compile_context>

<pallas_src>
import math

import jax
import jax.numpy as jnp
from jax.experimental import pallas as pl
from jax.experimental.pallas import tpu as pltpu


_SQRT_2_OVER_PI = math.sqrt(2.0 / math.pi)


def _gelu_tanh(x):
    # tanh-approximate GELU: transcendental lands in the EUP slot (free on v6e/v7x)
    # instead of a long erf polynomial on the VALU. <~3e-3 abs deviation from exact erf.
    return 0.5 * x * (1.0 + jnp.tanh(_SQRT_2_OVER_PI * (x + 0.044715 * (x * x * x))))


def _gelu_exact(x):
    # Exact-erf GELU (PyTorch nn.GELU() default) -- used for the reference check only.
    return 0.5 * x * (1.0 + jax.lax.erf(x * (1.0 / math.sqrt(2.0))))


# ----------------------------------------------------------------------------- kernels
def ffn_kernel_resident(x_ref, w1_ref, b1_ref, w2_ref, b2_ref, o_ref):
    """Grid: (row tiles,). W1/W2/biases are VMEM-resident for the whole call."""
    h = jnp.dot(x_ref[...], w1_ref[...], preferred_element_type=jnp.float32)
    h = _gelu_tanh(h + b1_ref[...])
    # TODO(synk): training-mode Dropout (stochastic masking) not implemented; eval-mode identity.
    y = jnp.dot(h.astype(w2_ref.dtype), w2_ref[...], preferred_element_type=jnp.float32)
    o_ref[...] = (y + b2_ref[...]).astype(o_ref.dtype)


def ffn_kernel_split(x_ref, w1_ref, b1_ref, w2_ref, b2_ref, o_ref, acc_ref):
    """Grid: (row tiles [parallel], d_ff tiles [arbitrary reduction]) with f32 accumulator."""
    j = pl.program_id(1)

    @pl.when(j == 0)
    def _():
        acc_ref[...] = jnp.zeros_like(acc_ref)

    h = jnp.dot(x_ref[...], w1_ref[...], preferred_element_type=jnp.float32)
    h = _gelu_tanh(h + b1_ref[...])
    acc_ref[...] += jnp.dot(h.astype(w2_ref.dtype), w2_ref[...],
                            preferred_element_type=jnp.float32)

    @pl.when(j == pl.num_programs(1) - 1)
    def _():
        o_ref[...] = (acc_ref[...] + b2_ref[...]).astype(o_ref.dtype)


# ----------------------------------------------------------------------------- helpers
def _round_up(x, m):
    return ((x + m - 1) // m) * m


def _buffered_supported():
    try:
        pl.BlockSpec((8, 128), lambda i: (0, 0), pipeline_mode=pl.Buffered(1))
        return True
    except Exception:
        return False


_BUFFERED_OK = _buffered_supported()


def _const_spec(shape, index_map):
    """BlockSpec for operands whose block index never changes: single-buffer them."""
    if _BUFFERED_OK:
        return pl.BlockSpec(shape, index_map, pipeline_mode=pl.Buffered(1))
    return pl.BlockSpec(shape, index_map)


def _vmem_budget_bytes():
    # 75% of physical VMEM: ~96 MiB on v5e/v6e (128 MiB), ~48 MiB on v7x (64 MiB),
    # leaving headroom for compiler internal scratch / semaphores.
    try:
        cap = int(pltpu.get_tpu_info().vmem_capacity_bytes)
    except Exception:
        cap = 128 * 1024 * 1024
    return max(32 * 1024 * 1024, int(cap * 0.75))


def _estimate_vmem_bytes(tr, d_model_p, d_ff_p, tf, out_bytes, resident):
    bf16, f32 = 2, 4
    wbuf = 1 if _BUFFERED_OK else 2          # weight buffering factor in resident mode
    est = 2 * tr * d_model_p * bf16          # x tile (double-buffered)
    est += 2 * tr * d_model_p * out_bytes    # out tile (double-buffered)
    if resident:
        est += wbuf * 2 * d_model_p * d_ff_p * bf16   # W1 + W2 resident
        est += tr * d_ff_p * (f32 + bf16)              # h (f32) + bf16 copy for 2nd matmul
    else:
        est += 2 * 2 * d_model_p * tf * bf16           # W1/W2 ff-slices (double-buffered)
        est += tr * d_model_p * f32                    # resident f32 accumulator
        est += tr * tf * (f32 + bf16)                  # h slice temporaries
    est += 2 * (d_ff_p + d_model_p) * f32              # biases (negligible)
    return est


# ----------------------------------------------------------------------------- wrapper
def pointwise_ffn(x, w1, b1, w2, b2, *, tile_rows=512, tile_ff=1024, force_resident=None):
    """Eval-mode PointwiseFeedForwardNetwork: Linear -> GELU -> Linear (Dropout = identity).

    x:  (batch, seq, d_model)
    w1: (d_model, d_ff)   b1: (d_ff,)     (stored transposed for x @ W)
    w2: (d_ff, d_model)   b2: (d_model,)
    For best performance pass w1/w2 already in bf16 (pre-cast once at the caller).
    """
    batch, seq, d_model = x.shape
    d_ff = w1.shape[1]
    rows = batch * seq
    out_dtype = x.dtype
    out_bytes = jnp.dtype(out_dtype).itemsize

    budget = _vmem_budget_bytes()

    # Lane-dense d_model (no-op when already a 128-multiple; zero-padding is exact).
    d_model_p = _round_up(d_model, 128)

    # Row tiling: large tiles amortize grid-step overhead and weight streaming.
    tr = min(tile_rows, _round_up(rows, 16))
    # Keep >=2 row tiles when possible so the "parallel" axis can use both v7x TCs.
    if pl.cdiv(rows, tr) < 2 and tr >= 32:
        tr = _round_up((tr + 1) // 2, 16)
    rows_p = _round_up(rows, tr)

    # d_ff tiling / padding (always a 128-multiple; pad instead of silently using full d_ff).
    d_ff_128 = _round_up(d_ff, 128)
    tf = min(_round_up(tile_ff, 128), d_ff_128)

    resident_fits = _estimate_vmem_bytes(tr, d_model_p, d_ff_128, tf, out_bytes, True) <= budget
    resident = resident_fits if force_resident is None else bool(force_resident)

    if resident:
        d_ff_p = d_ff_128
    else:
        d_ff_p = _round_up(d_ff, tf)
        # Shrink the row tile if the split variant still overflows the budget.
        while (tr > 16 and
               _estimate_vmem_bytes(tr, d_model_p, d_ff_p, tf, out_bytes, False) > budget):
            tr = _round_up(tr // 2, 16)
        rows_p = _round_up(rows, tr)

    # --- operand prep: bf16 cast BEFORE padding (single pass; pads are no-ops for
    #     production shapes already at 128-multiples) ---
    x2d = x.reshape(rows, d_model)
    if x2d.dtype != jnp.bfloat16:
        x2d = x2d.astype(jnp.bfloat16)
    if (rows_p, d_model_p) != (rows, d_model):
        x2d = jnp.pad(x2d, ((0, rows_p - rows), (0, d_model_p - d_model)))

    w1_bf = w1 if w1.dtype == jnp.bfloat16 else w1.astype(jnp.bfloat16)
    w2_bf = w2 if w2.dtype == jnp.bfloat16 else w2.astype(jnp.bfloat16)
    if (d_model_p, d_ff_p) != (d_model, d_ff):
        w1_bf = jnp.pad(w1_bf, ((0, d_model_p - d_model), (0, d_ff_p - d_ff)))
        w2_bf = jnp.pad(w2_bf, ((0, d_ff_p - d_ff), (0, d_model_p - d_model)))
    b1_2d = jnp.pad(b1.astype(jnp.float32), (0, d_ff_p - d_ff)).reshape(1, d_ff_p)
    b2_2d = jnp.pad(b2.astype(jnp.float32), (0, d_model_p - d_model)).reshape(1, d_model_p)

    if resident:
        grid = (rows_p // tr,)
        in_specs = [
            pl.BlockSpec((tr, d_model_p), lambda i: (i, 0)),      # x row tile
            _const_spec((d_model_p, d_ff_p), lambda i: (0, 0)),   # W1 (resident, fetched once)
            _const_spec((1, d_ff_p), lambda i: (0, 0)),           # b1
            _const_spec((d_ff_p, d_model_p), lambda i: (0, 0)),   # W2 (resident, fetched once)
            _const_spec((1, d_model_p), lambda i: (0, 0)),        # b2
        ]
        out_specs = pl.BlockSpec((tr, d_model_p), lambda i: (i, 0))
        kernel = ffn_kernel_resident
        scratch_shapes = []
        dim_sem = ("parallel",)
    else:
        grid = (rows_p // tr, d_ff_p // tf)
        in_specs = [
            pl.BlockSpec((tr, d_model_p), lambda i, j: (i, 0)),   # x row tile
            pl.BlockSpec((d_model_p, tf), lambda i, j: (0, j)),   # W1 ff-slice
            pl.BlockSpec((1, tf), lambda i, j: (0, j)),           # b1 ff-slice
            pl.BlockSpec((tf, d_model_p), lambda i, j: (j, 0)),   # W2 ff-slice
            _const_spec((1, d_model_p), lambda i, j: (0, 0)),     # b2 (constant)
        ]
        out_specs = pl.BlockSpec((tr, d_model_p), lambda i, j: (i, 0))
        kernel = ffn_kernel_split
        scratch_shapes = [pltpu.VMEM((tr, d_model_p), jnp.float32)]
        dim_sem = ("parallel", "arbitrary")

    out2d = pl.pallas_call(
        kernel,
        out_shape=jax.ShapeDtypeStruct((rows_p, d_model_p), out_dtype),
        grid_spec=pltpu.PrefetchScalarGridSpec(
            num_scalar_prefetch=0,
            grid=grid,
            in_specs=in_specs,
            out_specs=out_specs,
            scratch_shapes=scratch_shapes,
        ),
        compiler_params=pltpu.CompilerParams(
            dimension_semantics=dim_sem,
            vmem_limit_bytes=budget,
        ),
    )(x2d, w1_bf, b1_2d, w2_bf, b2_2d)

    return out2d[:rows, :d_model].reshape(batch, seq, d_model)


# ----------------------------------------------------------------------------- test
if __name__ == "__main__":
    # Small shapes consistent with forward(x: (batch, seq, d_model)).
    batch, seq, d_model, d_ff = 2, 8, 32, 64
    dropout_prob = 0.1  # inference mode -> identity

    key = jax.random.PRNGKey(0)
    kx, kw1, kb1, kw2, kb2 = jax.random.split(key, 5)

    x = jax.random.normal(kx, (batch, seq, d_model), dtype=jnp.float32)

    # Deterministic parameter init matching nn.Linear(d_model,d_ff) / nn.Linear(d_ff,d_model),
    # stored already transposed for x @ W: (in_features, out_features).
    lim1 = 1.0 / math.sqrt(d_model)
    lim2 = 1.0 / math.sqrt(d_ff)
    w1 = jax.random.uniform(kw1, (d_model, d_ff), minval=-lim1, maxval=lim1, dtype=jnp.float32)
    b1 = jax.random.uniform(kb1, (d_ff,), minval=-lim1, maxval=lim1, dtype=jnp.float32)
    w2 = jax.random.uniform(kw2, (d_ff, d_model), minval=-lim2, maxval=lim2, dtype=jnp.float32)
    b2 = jax.random.uniform(kb2, (d_model,), minval=-lim2, maxval=lim2, dtype=jnp.float32)

    # Pre-cast weights to bf16 once (keeps the f32->bf16 cast out of the per-call hot path).
    w1_bf = w1.astype(jnp.bfloat16)
    w2_bf = w2.astype(jnp.bfloat16)

    # Pure-JAX f32 reference (exact-erf GELU; eval-mode Dropout = identity).
    # Tolerance covers the bf16 MXU operands (f32 accumulation) and the tanh-approx GELU.
    ref = _gelu_exact(x @ w1 + b1) @ w2 + b2

    # 1) Default path: weights fully VMEM-resident for these shapes.
    out = jax.block_until_ready(pointwise_ffn(x, w1_bf, b1, w2_bf, b2))
    assert out.shape == (batch, seq, d_model)
    assert jnp.allclose(out, ref, atol=2e-2, rtol=2e-2), float(jnp.max(jnp.abs(out - ref)))

    # 2) Forced d_ff-split (accumulator) path, to exercise the large-weight variant too.
    out2 = jax.block_until_ready(pointwise_ffn(x, w1_bf, b1, w2_bf, b2, force_resident=False))
    assert jnp.allclose(out2, ref, atol=2e-2, rtol=2e-2), float(jnp.max(jnp.abs(out2 - ref)))

    print("KERNEL_OK")
</pallas_src>

<mosaic_0001>
module attributes {stable_mosaic.version = 11 : i64} {
  func.func @ffn_kernel_resident(%arg0: i32, %arg1: memref<16x128xbf16, #tpu.memory_space<vmem>>, %arg2: memref<128x128xbf16, #tpu.memory_space<vmem>>, %arg3: memref<1x128xf32, #tpu.memory_space<vmem>>, %arg4: memref<128x128xbf16, #tpu.memory_space<vmem>>, %arg5: memref<1x128xf32, #tpu.memory_space<vmem>>, %arg6: memref<16x128xf32, #tpu.memory_space<vmem>>) attributes {dimension_semantics = [#tpu.dimension_semantics<parallel>], iteration_bounds = array<i64: 1>, scalar_prefetch = 0 : i64, scratch_operands = 0 : i64, tpu.core_type = #tpu.core_type<tc>, window_params = [{transform_indices = @transform_0, window_bounds = array<i64: 16, 128>}, {pipeline_mode = #tpu.pipeline_mode<synchronous>, transform_indices = @transform_1, window_bounds = array<i64: 128, 128>}, {pipeline_mode = #tpu.pipeline_mode<synchronous>, transform_indices = @transform_2, window_bounds = array<i64: 1, 128>}, {pipeline_mode = #tpu.pipeline_mode<synchronous>, transform_indices = @transform_3, window_bounds = array<i64: 128, 128>}, {pipeline_mode = #tpu.pipeline_mode<synchronous>, transform_indices = @transform_4, window_bounds = array<i64: 1, 128>}, {transform_indices = @transform_5, window_bounds = array<i64: 16, 128>}]} {
    %c0 = arith.constant 0 : index
    %c0_0 = arith.constant 0 : index
    %0 = vector.load %arg1[%c0, %c0_0] : memref<16x128xbf16, #tpu.memory_space<vmem>>, vector<16x128xbf16>
    %c0_1 = arith.constant 0 : index
    %c0_2 = arith.constant 0 : index
    %1 = vector.load %arg2[%c0_1, %c0_2] : memref<128x128xbf16, #tpu.memory_space<vmem>>, vector<128x128xbf16>
    %cst = arith.constant dense<0.000000e+00> : vector<16x128xf32>
    %2 = tpu.matmul %0, %1, %cst {dimension_numbers = #tpu.dot_dimension_numbers<[1], [0], [0], [1], [0, 0, 1, 1], [], []>} : vector<16x128xbf16>, vector<128x128xbf16>, vector<16x128xf32> -> vector<16x128xf32>
    %c0_3 = arith.constant 0 : index
    %c0_4 = arith.constant 0 : index
    %3 = vector.load %arg3[%c0_3, %c0_4] : memref<1x128xf32, #tpu.memory_space<vmem>>, vector<1x128xf32>
    %4 = vector.broadcast %3 : vector<1x128xf32> to vector<16x128xf32>
    %5 = arith.addf %2, %4 : vector<16x128xf32>
    %cst_5 = arith.constant 5.000000e-01 : f32
    %6 = vector.broadcast %cst_5 : f32 to vector<16x128xf32>
    %7 = arith.mulf %6, %5 : vector<16x128xf32>
    %8 = arith.mulf %5, %5 : vector<16x128xf32>
    %9 = arith.mulf %8, %5 : vector<16x128xf32>
    %cst_6 = arith.constant 4.471500e-02 : f32
    %10 = vector.broadcast %cst_6 : f32 to vector<16x128xf32>
    %11 = arith.mulf %10, %9 : vector<16x128xf32>
    %12 = arith.addf %5, %11 : vector<16x128xf32>
    %cst_7 = arith.constant 0.797884583 : f32
    %13 = vector.broadcast %cst_7 : f32 to vector<16x128xf32>
    %14 = arith.mulf %13, %12 : vector<16x128xf32>
    %15 = math.tanh %14 : vector<16x128xf32>
    %cst_8 = arith.constant 1.000000e+00 : f32
    %16 = vector.broadcast %cst_8 : f32 to vector<16x128xf32>
    %17 = arith.addf %16, %15 : vector<16x128xf32>
    %18 = arith.mulf %7, %17 : vector<16x128xf32>
    %19 = arith.truncf %18 : vector<16x128xf32> to vector<16x128xbf16>
    %c0_9 = arith.constant 0 : index
    %c0_10 = arith.constant 0 : index
    %20 = vector.load %arg4[%c0_9, %c0_10] : memref<128x128xbf16, #tpu.memory_space<vmem>>, vector<128x128xbf16>
    %cst_11 = arith.constant dense<0.000000e+00> : vector<16x128xf32>
    %21 = tpu.matmul %19, %20, %cst_11 {dimension_numbers = #tpu.dot_dimension_numbers<[1], [0], [0], [1], [0, 0, 1, 1], [], []>} : vector<16x128xbf16>, vector<128x128xbf16>, vector<16x128xf32> -> vector<16x128xf32>
    %c0_12 = arith.constant 0 : index
    %c0_13 = arith.constant 0 : index
    %22 = vector.load %arg5[%c0_12, %c0_13] : memref<1x128xf32, #tpu.memory_space<vmem>>, vector<1x128xf32>
    %23 = vector.broadcast %22 : vector<1x128xf32> to vector<16x128xf32>
    %24 = arith.addf %21, %23 : vector<16x128xf32>
    %c0_14 = arith.constant 0 : index
    %c0_15 = arith.constant 0 : index
    %25 = vector.load %arg6[%c0_14, %c0_15] : memref<16x128xf32, #tpu.memory_space<vmem>>, vector<16x128xf32>
    tpu.vector_store %arg6[%c0_14, %c0_15], %24 {strides = array<i32>} : memref<16x128xf32, #tpu.memory_space<vmem>>, vector<16x128xf32>,
    return
  }
  func.func @transform_0(%arg0: i32) -> (i32, i32) {
    %c0_i32 = arith.constant 0 : i32
    %c0_i32_0 = arith.constant 0 : i32
    return %arg0, %c0_i32 : i32, i32
  }
  func.func @transform_1(%arg0: i32) -> (i32, i32) {
    %c0_i32 = arith.constant 0 : i32
    %c0_i32_0 = arith.constant 0 : i32
    %c0_i32_1 = arith.constant 0 : i32
    return %c0_i32, %c0_i32_0 : i32, i32
  }
  func.func @transform_2(%arg0: i32) -> (i32, i32) {
    %c0_i32 = arith.constant 0 : i32
    %c0_i32_0 = arith.constant 0 : i32
    %c0_i32_1 = arith.constant 0 : i32
    return %c0_i32, %c0_i32_0 : i32, i32
  }
  func.func @transform_3(%arg0: i32) -> (i32, i32) {
    %c0_i32 = arith.constant 0 : i32
    %c0_i32_0 = arith.constant 0 : i32
    %c0_i32_1 = arith.constant 0 : i32
    return %c0_i32, %c0_i32_0 : i32, i32
  }
  func.func @transform_4(%arg0: i32) -> (i32, i32) {
    %c0_i32 = arith.constant 0 : i32
    %c0_i32_0 = arith.constant 0 : i32
    %c0_i32_1 = arith.constant 0 : i32
    return %c0_i32, %c0_i32_0 : i32, i32
  }
  func.func @transform_5(%arg0: i32) -> (i32, i32) {
    %c0_i32 = arith.constant 0 : i32
    %c0_i32_0 = arith.constant 0 : i32
    return %arg0, %c0_i32 : i32, i32
  }
}

</mosaic_0001>

<bundles_post_ra>
// kernel: tpu_custom_call.1
= control target key start
LH: loop header
LB: loop body
LE: loop exit
PB: predicated region body
PF: predicated region fallthrough
CT: control target
= control target key end

     0   :  { %10 = vsyncpa [#allocation3], 0  ;;  %s538_s0 = inlined_call_operand.hbm [shape: bf16[16,128], index: 0, kind: input, shape index: {}]   ;;  %s539_s1 = inlined_call_operand.hbm [shape: bf16[128,128], index: 1, kind: input, shape index: {}]   ;;  %s540_s2 = inlined_call_operand.vmem [shape: f32[1,128], index: 2, kind: input, shape index: {}]   ;;  %s541_s3 = inlined_call_operand.hbm [shape: bf16[128,128], index: 3, kind: input, shape index: {}]   ;;  %s542_s4 = inlined_call_operand.vmem [shape: f32[1,128], index: 4, kind: input, shape index: {}]   ;;  %s543_s5 = inlined_call_operand.hbm [shape: f32[16,128], index: 5, kind: output, shape index: {}]  }
   0x1   :  { %11 = vsyncpa [#allocation6], 0 }
   0x2   :  { %12 = vsyncpa [#allocation4], 0  ;;  %s30_s20 = sshll.u32 %s539_s1, 4  ;;  %s482_s21 = smov [#allocation5]   ;;  %s31_s20 = int_to_ptr.hbm [resolvable:$true] %s30_s20 }
   0x3   :  { %s32_s22 = sshll.u32 %s482_s21, 4  ;;  %s17_s25 = sshll.u32 %s538_s0, 4  ;;  %s33_s22 = int_to_ptr.vmem [resolvable:$true] %s32_s22  ;;  %s18_s25 = int_to_ptr.hbm [resolvable:$true] %s17_s25 }
   0x4   :  { %s483_s26 = smov 64   ;;  %s484_s27 = smov 4  }
   0x5   :  { %38 = dma.hbm_to_vmem [thread:$0]  %s31_s20, 1024, %s33_s22, [#allocation6], %s483_s26, %s483_s26, %s484_s27  }
   0x6   :  { %s485_s28 = smov [#allocation2]   ;;  %s45_s7 = sshll.u32 %s541_s3, 4  ;;  %s46_s7 = int_to_ptr.hbm [resolvable:$true] %s45_s7 }
   0x7   :  { %s19_s29 = sshll.u32 %s485_s28, 4  ;;  %s486_s1 = smov [#allocation7]   ;;  %s20_s29 = int_to_ptr.vmem [resolvable:$true] %s19_s29 }
   0x8   :  { %25 = dma.hbm_to_vmem [thread:$0]  %s18_s25, 128, %s20_s29, [#allocation3], %s483_s26, %s483_s26, %s484_s27  }
   0x9   :  { %s47_s8 = sshll.u32 %s486_s1, 4  ;;  %s48_s8 = int_to_ptr.vmem [resolvable:$true] %s47_s8 }
   0xa   :  { %53 = dma.hbm_to_vmem [thread:$0]  %s46_s7, 1024, %s48_s8, [#allocation6], %s483_s26, %s483_s26, %s484_s27  }
   0xb   :  { %476 = dma.done.wait [#allocation3], 128  }
   0xc   :  { %477 = vsyncadd [#allocation3], 4294967168 }
   0xd   :  { %478 = dma.done.wait [#allocation6], 2048  }
   0xe   :  { %479 = vsyncadd [#allocation6], 4294965248  ;;  %v357_v0 = vld [vmem:[#allocation5 + $0x38] sm:$0xff]  ;;  %v356_v1 = vld [vmem:[#allocation5 + $0x30] sm:$0xff]  ;;  %s487_s10 = smov [#allocation8]   ;;  %s267_s14 = sshll.u32 %s543_s5, 4  ;;  %s268_s14 = int_to_ptr.hbm [resolvable:$true] %s267_s14 }
   0xf   :  { %144 = vmatpush.bf16.msra.mxu0 %v357_v0  ;;  %v355_v2 = vld [vmem:[#allocation5 + $0x28] sm:$0xff]  ;;  %v354_v3 = vld [vmem:[#allocation5 + $0x20] sm:$0xff]  ;;  %v353_v4 = vld [vmem:[#allocation5 + $0x18] sm:$0xff]  ;;  %s265_s11 = sshll.u32 %s487_s10, 4  ;;  %s488_s15 = smov 128   ;;  %s266_s11 = int_to_ptr.vmem [resolvable:$true] %s265_s11 }
  0x10   :  { %v352_v5 = vld [vmem:[#allocation5 + $0x10] sm:$0xff]  ;;  %v351_v6 = vld [vmem:[#allocation5 + $0x8] sm:$0xff]  ;;  %v350_v7 = vld [vmem:[#allocation5] sm:$0xff]  ;;  %s489_s16 = smov 8  }
  0x11   :  { %v349_v8 = vld [vmem:[#allocation2] sm:$0xff]  ;;  %v364_v10 = vld [vmem:[#allocation7 + $0x30] sm:$0xff]  ;;  %v363_v11 = vld [vmem:[#allocation7 + $0x28] sm:$0xff] }
  0x12   :  { %v365_v9 = vld [vmem:[#allocation7 + $0x38] sm:$0xff]  ;;  %v362_v12 = vld [vmem:[#allocation7 + $0x20] sm:$0xff]  ;;  %v360_v14 = vld [vmem:[#allocation7 + $0x10] sm:$0xff] }
  0x13   :  { %145 = vmatpush.bf16.msra.mxu0 %v356_v1  ;;  %245 = vmatpush.bf16.msra.mxu1 %v365_v9  ;;  %v361_v13 = vld [vmem:[#allocation7 + $0x18] sm:$0xff]  ;;  %v359_v15 = vld [vmem:[#allocation7 + $0x8] sm:$0xff]  ;;  %v358_v16 = vld [vmem:[#allocation7] sm:$0xff] }
  0x14   :  { %v374_v17 = vld [vmem:[%s540_s2] ss:$0 sm:$0xff] }
  0x15   :  { %v375_v41 = vld [vmem:[%s542_s4] ss:$0 sm:$0xff] }
  0x17   :  { %146 = vmatpush.bf16.msra.mxu0 %v355_v2  ;;  %246 = vmatpush.bf16.msra.mxu1 %v364_v10 }
  0x1b   :  { %147 = vmatpush.bf16.msra.mxu0 %v354_v3  ;;  %247 = vmatpush.bf16.msra.mxu1 %v363_v11 }
  0x1f   :  { %148 = vmatpush.bf16.msra.mxu0 %v353_v4  ;;  %248 = vmatpush.bf16.msra.mxu1 %v362_v12 }
  0x23   :  { %149 = vmatpush.bf16.msra.mxu0 %v352_v5  ;;  %249 = vmatpush.bf16.msra.mxu1 %v361_v13 }
  0x27   :  { %150 = vmatpush.bf16.msra.mxu0 %v351_v6  ;;  %250 = vmatpush.bf16.msra.mxu1 %v360_v14 }
  0x2b   :  { %151 = vmatpush.bf16.msra.mxu0 %v350_v7  ;;  %251 = vmatpush.bf16.msra.mxu1 %v359_v15 }
  0x2e   :  { %152 = vmatmul.bf16.vlgmr.msra.gmra.mxu0 %v349_v8 }
  0x2f   :  { %252 = vmatpush.bf16.msra.mxu1 %v358_v16 }
  0xab   :  { %v153_v18 = vpop.f32.mrf.mxu0 }
  0xac   :  { %v154_v19 = vadd.f32 %v374_v17, %v153_v18 }
  0xae   :  { %v160_v20 = vmul.f32 %v154_v19, %v154_v19  ;;  %v158_v35 = vmul.f32 0.5, %v154_v19 }
  0xb0   :  { %v162_v21 = vmul.f32 %v160_v20, %v154_v19 }
  0xb2   :  { %v164_v22 = vmul.f32 0.044715, %v162_v21 }
  0xb3   :  { %v155_v23 = vpop.f32.mrf.mxu0 }
  0xb4   :  { %v156_v24 = vadd.f32 %v374_v17, %v155_v23  ;;  %v166_v25 = vadd.f32 %v164_v22, %v154_v19 }
  0xb6   :  { %v161_v26 = vmul.f32 %v156_v24, %v156_v24  ;;  %v168_v28 = vmul.f32 0.7978846, %v166_v25  ;;  %v159_v36 = vmul.f32 0.5, %v156_v24 }
  0xb8   :  { %v163_v27 = vmul.f32 %v161_v26, %v156_v24  ;;  %376 = vtanh.f32 %v168_v28 }
  0xba   :  { %v165_v29 = vmul.f32 0.044715, %v163_v27 }
  0xbc   :  { %v167_v30 = vadd.f32 %v165_v29, %v156_v24 }
  0xbe   :  { %v169_v31 = vmul.f32 0.7978846, %v167_v30  ;;  %v377_v32 = vpop.eup %376 }
  0xbf   :  { %v172_v33 = vadd.f32 1.0, %v377_v32 }
  0xc0   :  { %378 = vtanh.f32 %v169_v31 }
  0xc1   :  { %v174_v38 = vmul.f32 %v172_v33, %v158_v35 }
  0xc6   :  { %v379_v34 = vpop.eup %378 }
  0xc7   :  { %v173_v37 = vadd.f32 1.0, %v379_v34 }
  0xc9   :  { %v175_v39 = vmul.f32 %v173_v37, %v159_v36 }
  0xcb   :  { %v176_v40 = vpack.c.bf16 %v175_v39, %v174_v38 }
  0xcd   :  { %253 = vmatmul.bf16.vlgmr.msra.gmra.mxu1 %v176_v40 }
 0x14a   :  { %v254_v42 = vpop.f32.mrf.mxu1 }
 0x14b   :  { %v255_v43 = vadd.f32 %v375_v41, %v254_v42 }
 0x14d   :  { %259 = vst [vmem:[#allocation8] sm:$0xff] %v255_v43 }
 0x152   :  { %v256_v44 = vpop.f32.mrf.mxu1 }
 0x153   :  { %v257_v45 = vadd.f32 %v375_v41, %v256_v44 }
 0x155   :  { %260 = vst [vmem:[#allocation8 + $0x8] sm:$0xff] %v257_v45 }
 0x156   :  { %273 = dma.vmem_to_hbm [thread:$0]  %s266_s11, 256, %s268_s14, [#allocation4], %s488_s15, %s488_s15, %s489_s16  }
 0x157   :  { %480 = dma.done.wait [#allocation4], 256  }
 0x158   :  { %481 = vsyncadd [#allocation4], 4294967040 }
 0x159   :  { %278 = vsyncpa [#allocation3], 1 }
 0x15a   :  { %279 = vsyncpa [#allocation6], 1 }
 0x15b   :  { %280 = vsyncpa [#allocation4], 1 }

</bundles_post_ra>
